<compile_context>
chip_gen: v5e
topology: v5e:2x2
jax: 0.10.0
libtpu: 0.0.40
codegen_flags: <defaults>
</compile_context>

<pallas_src>
import functools

import jax
import jax.numpy as jnp
from jax.experimental import pallas as pl
from jax.experimental.pallas import tpu as pltpu


def _softmax_entropy_kernel(prob_ref, label_ref, out_ref, acc_ref, *, total_b, tile_b):
    """Accumulates sum(label * prob) over batch tiles; finalizes -sum / B."""
    pid = pl.program_id(0)

    @pl.when(pid == 0)
    def _init():
        acc_ref[...] = jnp.zeros_like(acc_ref)

    # DMA happened in native dtype; cast to f32 in-kernel (works on v5e/v6e/v7x).
    b = prob_ref[...].astype(jnp.float32) * label_ref[...].astype(jnp.float32)

    # Mask padded rows of a partial last batch tile (only traced when needed).
    if total_b % tile_b != 0:
        row = jax.lax.broadcasted_iota(jnp.int32, b.shape, 0) + pid * tile_b
        b = jnp.where(row < total_b, b, jnp.zeros_like(b))

    # One fused reduce over classes AND batch rows of this tile; accumulate in
    # an f32 (1,1) VMEM scratch that persists across grid steps.
    acc_ref[...] += jnp.sum(b, axis=(0, 1), keepdims=True)

    @pl.when(pid == pl.num_programs(0) - 1)
    def _finalize():
        # Negate and 1/B folded into a single scalar constant.
        out_ref[...] = acc_ref[...] * jnp.float32(-1.0 / total_b)


def softmax_entropy(prob: jax.Array, label: jax.Array,
                    *, target_tile_bytes: int = 2 * 1024 * 1024) -> jax.Array:
    assert prob.shape == label.shape and prob.ndim == 2
    B, C = prob.shape
    itemsize = max(jnp.dtype(prob.dtype).itemsize, jnp.dtype(label.dtype).itemsize)

    # Batch tile: aim for ~target_tile_bytes per input tile (big tiles amortize
    # per-grid-step overhead), multiple-of-8 sublanes, capped at B.
    # 2 inputs x 2 pipeline buffers x 2 MiB = 8 MiB << scoped-VMEM default on
    # every generation (16 / 32 / 32 MiB for v5e / v6e / v7x).
    tb = max(1, target_tile_bytes // (itemsize * C))
    if tb >= B:
        tb = B                       # whole array in a single block
    else:
        tb = max(8, (tb // 8) * 8)   # multiple-of-8 sublane tiling

    grid = (pl.cdiv(B, tb),)
    kernel = functools.partial(_softmax_entropy_kernel, total_b=B, tile_b=tb)

    out = pl.pallas_call(
        kernel,
        out_shape=jax.ShapeDtypeStruct((1, 1), jnp.float32),
        grid=grid,
        in_specs=[
            pl.BlockSpec((tb, C), lambda i: (i, 0)),
            pl.BlockSpec((tb, C), lambda i: (i, 0)),
        ],
        out_specs=pl.BlockSpec((1, 1), lambda i: (0, 0)),
        scratch_shapes=[pltpu.VMEM((1, 1), jnp.float32)],
        compiler_params=pltpu.CompilerParams(
            # Batch axis carries the scalar accumulator -> reduction semantics.
            dimension_semantics=("arbitrary",),
        ),
    )(prob, label)
    return out[0, 0]


def softmax_entropy_ref(prob, label):
    # pure-JAX reference mirroring the PyTorch module (f32 math).
    b = (label.astype(jnp.float32) * prob.astype(jnp.float32)).sum(axis=1)
    return -1.0 * b.mean(axis=0)


if __name__ == "__main__":
    key = jax.random.PRNGKey(0)
    k1, k2, k3, k4 = jax.random.split(key, 4)

    # --- small demo shape: (batch, classes) = (8, 32), f32, single tile ---
    B, C = 8, 32
    logits = jax.random.normal(k1, (B, C), dtype=jnp.float32)
    prob = jax.nn.log_softmax(logits, axis=1)
    label = jax.nn.softmax(jax.random.normal(k2, (B, C), dtype=jnp.float32), axis=1)

    out = softmax_entropy(prob, label)
    jax.block_until_ready(out)
    ref = softmax_entropy_ref(prob, label)
    assert jnp.allclose(out, ref, atol=1e-5, rtol=1e-5), (out, ref)

    # --- tiled + masked path: bf16 inputs, batch not a multiple of the tile ---
    B2, C2 = 1000, 256
    prob2 = jax.nn.log_softmax(
        jax.random.normal(k3, (B2, C2), dtype=jnp.float32), axis=1
    ).astype(jnp.bfloat16)
    label2 = jax.nn.softmax(
        jax.random.normal(k4, (B2, C2), dtype=jnp.float32), axis=1
    ).astype(jnp.bfloat16)

    out2 = softmax_entropy(prob2, label2, target_tile_bytes=128 * 1024)
    jax.block_until_ready(out2)
    ref2 = softmax_entropy_ref(prob2, label2)
    assert jnp.allclose(out2, ref2, atol=1e-3, rtol=1e-3), (out2, ref2)

    print("KERNEL_OK")
</pallas_src>

<mosaic_0001>
module attributes {stable_mosaic.version = 11 : i64} {
  func.func @_softmax_entropy_kernel(%arg0: i32, %arg1: memref<8x32xf32, #tpu.memory_space<vmem>>, %arg2: memref<8x32xf32, #tpu.memory_space<vmem>>, %arg3: memref<1x1xf32, #tpu.memory_space<vmem>>, %arg4: memref<1x1xf32, #tpu.memory_space<vmem>>) attributes {dimension_semantics = [#tpu.dimension_semantics<arbitrary>], iteration_bounds = array<i64: 1>, scalar_prefetch = 0 : i64, scratch_operands = 1 : i64, tpu.core_type = #tpu.core_type<tc>, window_params = [{transform_indices = @transform_0, window_bounds = array<i64: 8, 32>}, {transform_indices = @transform_1, window_bounds = array<i64: 8, 32>}, {pipeline_mode = #tpu.pipeline_mode<synchronous>, transform_indices = @transform_2, window_bounds = array<i64: 1, 1>}]} {
    %c0_i32 = arith.constant 0 : i32
    %0 = arith.cmpi eq, %arg0, %c0_i32 : i32
    %1 = arith.extui %0 : i1 to i32
    %c0_i32_0 = arith.constant 0 : i32
    %2 = arith.cmpi ne, %1, %c0_i32_0 : i32
    scf.if %2 {
      %cst_10 = arith.constant 0.000000e+00 : f32
      %17 = vector.broadcast %cst_10 : f32 to vector<1x1xf32>
      %c0_11 = arith.constant 0 : index
      %c0_12 = arith.constant 0 : index
      %18 = vector.load %arg4[%c0_11, %c0_12] : memref<1x1xf32, #tpu.memory_space<vmem>>, vector<1x1xf32>
      tpu.vector_store %arg4[%c0_11, %c0_12], %17 {strides = array<i32>} : memref<1x1xf32, #tpu.memory_space<vmem>>, vector<1x1xf32>,
    } else {
    }
    %c0 = arith.constant 0 : index
    %c0_1 = arith.constant 0 : index
    %3 = vector.load %arg1[%c0, %c0_1] : memref<8x32xf32, #tpu.memory_space<vmem>>, vector<8x32xf32>
    %c0_2 = arith.constant 0 : index
    %c0_3 = arith.constant 0 : index
    %4 = vector.load %arg2[%c0_2, %c0_3] : memref<8x32xf32, #tpu.memory_space<vmem>>, vector<8x32xf32>
    %5 = arith.mulf %3, %4 : vector<8x32xf32>
    %c0_4 = arith.constant 0 : index
    %c0_5 = arith.constant 0 : index
    %6 = vector.load %arg4[%c0_4, %c0_5] : memref<1x1xf32, #tpu.memory_space<vmem>>, vector<1x1xf32>
    %7 = vector.shape_cast %5 : vector<8x32xf32> to vector<1x8x32xf32>
    %cst = arith.constant dense<0.000000e+00> : vector<1xf32>
    %8 = vector.multi_reduction <add>, %7, %cst [1, 2] : vector<1x8x32xf32> to vector<1xf32>
    %9 = vector.shape_cast %8 : vector<1xf32> to vector<1x1x1xf32>
    %10 = vector.extract %9[0, 0, 0] : f32 from vector<1x1x1xf32>
    %11 = vector.broadcast %10 : f32 to vector<1x1xf32>
    %12 = arith.addf %6, %11 : vector<1x1xf32>
    %c0_6 = arith.constant 0 : index
    %c0_7 = arith.constant 0 : index
    %13 = vector.load %arg4[%c0_6, %c0_7] : memref<1x1xf32, #tpu.memory_space<vmem>>, vector<1x1xf32>
    tpu.vector_store %arg4[%c0_6, %c0_7], %12 {strides = array<i32>} : memref<1x1xf32, #tpu.memory_space<vmem>>, vector<1x1xf32>,
    %c0_i32_8 = arith.constant 0 : i32
    %14 = arith.cmpi eq, %arg0, %c0_i32_8 : i32
    %15 = arith.extui %14 : i1 to i32
    %c0_i32_9 = arith.constant 0 : i32
    %16 = arith.cmpi ne, %15, %c0_i32_9 : i32
    scf.if %16 {
      %c0_10 = arith.constant 0 : index
      %c0_11 = arith.constant 0 : index
      %17 = vector.load %arg4[%c0_10, %c0_11] : memref<1x1xf32, #tpu.memory_space<vmem>>, vector<1x1xf32>
      %cst_12 = arith.constant -1.250000e-01 : f32
      %18 = vector.broadcast %cst_12 : f32 to vector<1x1xf32>
      %19 = arith.mulf %17, %18 : vector<1x1xf32>
      %c0_13 = arith.constant 0 : index
      %c0_14 = arith.constant 0 : index
      %20 = vector.load %arg3[%c0_13, %c0_14] : memref<1x1xf32, #tpu.memory_space<vmem>>, vector<1x1xf32>
      tpu.vector_store %arg3[%c0_13, %c0_14], %19 {strides = array<i32>} : memref<1x1xf32, #tpu.memory_space<vmem>>, vector<1x1xf32>,
    } else {
    }
    return
  }
  func.func @transform_0(%arg0: i32) -> (i32, i32) {
    %c0_i32 = arith.constant 0 : i32
    %c0_i32_0 = arith.constant 0 : i32
    return %arg0, %c0_i32 : i32, i32
  }
  func.func @transform_1(%arg0: i32) -> (i32, i32) {
    %c0_i32 = arith.constant 0 : i32
    %c0_i32_0 = arith.constant 0 : i32
    return %arg0, %c0_i32 : i32, i32
  }
  func.func @transform_2(%arg0: i32) -> (i32, i32) {
    %c0_i32 = arith.constant 0 : i32
    %c0_i32_0 = arith.constant 0 : i32
    %c0_i32_1 = arith.constant 0 : i32
    return %c0_i32, %c0_i32_0 : i32, i32
  }
}

</mosaic_0001>

<bundles_post_ra>
// kernel: tpu_custom_call.1
= control target key start
LH: loop header
LB: loop body
LE: loop exit
PB: predicated region body
PF: predicated region fallthrough
CT: control target
= control target key end

     0   :  { %7 = vsyncpa [#allocation4], 0  ;;  %s204_s0 = inlined_call_operand.hbm [shape: f32[8,32], index: 0, kind: input, shape index: {}]   ;;  %s205_s1 = inlined_call_operand.hbm [shape: f32[8,32], index: 1, kind: input, shape index: {}]   ;;  %s206_s2 = inlined_call_operand.hbm [shape: f32[1,1], index: 2, kind: output, shape index: {}]  }
   0x1   :  { %8 = vsyncpa [#allocation7], 0 }
   0x2   :  { %9 = vsyncpa [#allocation5], 0  ;;  %s15_s11 = sshll.u32 %s204_s0, 4  ;;  %s173_s12 = smov [#allocation3]   ;;  %s16_s11 = int_to_ptr.hbm [resolvable:$true] %s15_s11 }
   0x3   :  { %s17_s13 = sshll.u32 %s173_s12, 4  ;;  %s26_s16 = sshll.u32 %s205_s1, 4  ;;  %s18_s13 = int_to_ptr.vmem [resolvable:$true] %s17_s13  ;;  %s27_s16 = int_to_ptr.hbm [resolvable:$true] %s26_s16 }
   0x4   :  { %20 = dma.hbm_to_vmem [thread:$0]  %s16_s11, 128, %s18_s13, [#allocation4]  }
   0x5   :  { %s174_s17 = smov [#allocation6]  }
   0x6   :  { %s28_s18 = sshll.u32 %s174_s17, 4  ;;  %s29_s18 = int_to_ptr.vmem [resolvable:$true] %s28_s18 }
   0x7   :  { %31 = dma.hbm_to_vmem [thread:$0]  %s27_s16, 128, %s29_s18, [#allocation7]  }
   0x8   :  { %167 = dma.done.wait [#allocation4], 128  }
   0x9   :  { %168 = vsyncadd [#allocation4], 4294967168 }
   0xa   :  { %169 = dma.done.wait [#allocation7], 128  }
   0xb   :  { %170 = vsyncadd [#allocation7], 4294967168  ;;  %v46_v0 = vld [vmem:[#allocation3] sm:$0xff]  ;;  %v47_v1 = vld [vmem:[#allocation6] sm:$0xff]  ;;  %vm50_vm0 = vcmask 261120   ;;  %vm44_vm1 = vcmask 0  }
   0xc   :  { %v48_v2 = vmul.f32 %v47_v1, %v46_v0  ;;  %v175_v4 = vmov 0.0   ;;  %s176_s1 = smov [#allocation8]   ;;  %s78_s22 = sshll.u32 %s206_s2, 4  ;;  %s79_s22 = int_to_ptr.hbm [resolvable:$true] %s78_s22 }
   0xd   :  { %45 = vst.msk [vmem:[#allocation2] sm:$0x1] %vm44_vm1, %v175_v4  ;;  %s76_s19 = sshll.u32 %s176_s1, 4  ;;  %s77_s19 = int_to_ptr.vmem [resolvable:$true] %s76_s19 }
   0xe   :  { %v51_v3 = vsel %vm50_vm0, %v48_v2, 0.0 }
   0xf   :  { %52 = vadd.xlane.f32.xlu0 %v51_v3 }
  0x14   :  { %v49_v12 = vld [vmem:[#allocation2] sm:$0x1] }
  0x82   :  { %v53_v5 = vpop.xlane.xlu0 %52 }
  0x83   :  { %v54_v6 = vrot.slane %v53_v5, 4 }
  0x85   :  { %v55_v7 = vadd.f32 %v54_v6, %v53_v5 }
  0x87   :  { %v56_v8 = vrot.slane %v55_v7, 2 }
  0x89   :  { %v57_v9 = vadd.f32 %v56_v8, %v55_v7 }
  0x8b   :  { %v58_v10 = vrot.slane %v57_v9, 1 }
  0x8d   :  { %v59_v11 = vadd.f32 %v58_v10, %v57_v9 }
  0x8f   :  { %89 = vpush %v59_v11 }
  0xc0   :  { %s90_s0 = spop %89 }
  0xc1   :  { %v61_v13 = vstv %s90_s0 }
  0xc2   :  { %v62_v14 = vadd.f32 %v61_v13, %v49_v12 }
  0xc4   :  { %64 = vst.msk [vmem:[#allocation2] sm:$0x1] %vm44_vm1, %v62_v14 }
  0xcb   :  { %v68_v15 = vld [vmem:[#allocation2] sm:$0x1] }
  0xcc   :  { %v69_v16 = vmul.f32 -0.125, %v68_v15 }
  0xce   :  { %70 = vst.msk [vmem:[#allocation8] sm:$0x1] %vm44_vm1, %v69_v16 }
  0xcf   :  { %81 = dma.vmem_to_hbm [thread:$0]  %s77_s19, 16, %s79_s22, [#allocation5]  }
  0xd0   :  { %171 = dma.done.wait [#allocation5], 16  }
  0xd1   :  { %172 = vsyncadd [#allocation5], 4294967280 }
  0xd2   :  { %86 = vsyncpa [#allocation4], 1 }
  0xd3   :  { %87 = vsyncpa [#allocation7], 1 }
  0xd4   :  { %88 = vsyncpa [#allocation5], 1 }

</bundles_post_ra>
